<compile_context>
chip_gen: v6e
topology: v6e:2x2x1
jax: 0.10.0
libtpu: 0.0.40
codegen_flags: <defaults>
</compile_context>

<pallas_src>
import math
import functools
import numpy as np

import jax
import jax.numpy as jnp
from jax import lax
from jax.experimental import pallas as pl
from jax.experimental.pallas import tpu as pltpu


# ----------------------------- in-kernel helpers -----------------------------

def _gelu(x):
    # 0.5 * x * (1 + tanh(sqrt(2/pi) * (x + 0.044715 * x^3)))  (f32 elementwise)
    return 0.5 * x * (1.0 + jnp.tanh(math.sqrt(2.0 / math.pi) * (x + 0.044715 * x * x * x)))


def _layernorm(x, g, b, e=1e-5):
    # OpenAI-style layernorm (epsilon inside the sqrt), biased variance, f32.
    u = jnp.mean(x, axis=-1, keepdims=True)
    s = jnp.mean((x - u) ** 2, axis=-1, keepdims=True)
    return g * ((x - u) / jnp.sqrt(s + e)) + b


# ------------------------- stage 1: fused QKV projection ----------------------

def qkv_proj_kernel(x_ref, w_q_ref, b_q_ref, w_kvT_ref, b_kvT_ref,
                    q_ref, kT_ref, vT_ref):
    f32 = jnp.float32
    bf16 = jnp.bfloat16
    C = w_q_ref.shape[0]

    x = x_ref[0].astype(bf16)                                           # (tq, C)

    # queries in natural (tq, C) layout — plain full-depth matmul
    yq = jnp.dot(x, w_q_ref[...], preferred_element_type=f32) + b_q_ref[0]
    q_ref[0] = yq.astype(bf16)

    # keys / values emitted already transposed: (2C, tq) with T on the lane
    # axis (lane-dense RHS for the score matmul in stage 2, no XLA transpose
    # between the two pallas_calls).
    ykv = lax.dot_general(w_kvT_ref[...], x, (((1,), (1,)), ((), ())),
                          preferred_element_type=f32) + b_kvT_ref[...]  # (2C, tq)
    ykv = ykv.astype(bf16)
    kT_ref[0] = ykv[:C]                                                 # (C, tq)
    vT_ref[0] = ykv[C:]                                                 # (C, tq)


# --------- stage 2: flash-style attention + c_proj + LN1 + MLP + LN2 ----------

def attn_mlp_kernel(q_ref, kT_ref, vT_ref, x_ref,
                    w_aproj_ref, b_aproj_ref,       # attn c_proj : (C, C) bf16, (1, C)
                    g1_ref, b1_ref,                 # ln_1        : (1, C), (1, C)
                    w_fc_ref, b_fc_ref,             # mlp.c_fc    : (C, 4C) bf16, (1, 4C)
                    w_mproj_ref, b_mproj_ref,       # mlp.c_proj  : (4C, C) bf16, (1, C)
                    g2_ref, b2_ref,                 # ln_2        : (1, C), (1, C)
                    o_ref,
                    m_sc, l_sc, acc_sc,
                    *, n_head, d_head, scale):
    f32 = jnp.float32
    bf16 = jnp.bfloat16
    H, D = n_head, d_head
    tq = q_ref.shape[1]
    tk = kT_ref.shape[2]
    qi = pl.program_id(1)
    ki = pl.program_id(2)
    inv_sqrt_d = (1.0 / math.sqrt(D)) if scale else 1.0

    @pl.when(ki == 0)
    def _():
        m_sc[...] = jnp.full(m_sc.shape, -1e30, f32)
        l_sc[...] = jnp.zeros(l_sc.shape, f32)
        acc_sc[...] = jnp.zeros(acc_sc.shape, f32)

    # Causality: key tiles strictly past the diagonal contribute nothing.
    @pl.when(ki <= qi)
    def _():
        # causal mask shared across all heads: (tq, tk) iota compare
        row = qi * tq + lax.broadcasted_iota(jnp.int32, (tq, tk), 0)
        col = ki * tk + lax.broadcasted_iota(jnp.int32, (tq, tk), 1)
        mask = col <= row

        q_all = q_ref[0]                                          # (tq, C) bf16
        for h in range(H):                                        # unrolled, H static
            q_h = q_all[:, h * D:(h + 1) * D]                     # (tq, D)
            k_h = kT_ref[0, h * D:(h + 1) * D, :]                 # (D, tk) lane-dense
            v_h = vT_ref[0, h * D:(h + 1) * D, :]                 # (D, tk) lane-dense

            s = jnp.dot(q_h, k_h, preferred_element_type=f32)     # (tq, tk)
            if scale:
                s = s * inv_sqrt_d
            s = jnp.where(mask, s, -1e9)

            # online softmax (flash-style) per head
            m_prev = m_sc[h]
            m_new = jnp.maximum(m_prev, jnp.max(s, axis=-1, keepdims=True))
            alpha = jnp.exp(m_prev - m_new)
            p = jnp.exp(s - m_new)
            l_sc[h] = alpha * l_sc[h] + jnp.sum(p, axis=-1, keepdims=True)
            pv = lax.dot_general(p.astype(bf16), v_h, (((1,), (1,)), ((), ())),
                                 preferred_element_type=f32)      # (tq, D)
            acc_sc[h] = alpha * acc_sc[h] + pv
            m_sc[h] = m_new
        # TODO(synk): attn_dropout / resid_dropout are identity (eval mode, p=0).

    # Last contributing key tile for this query tile: finish the block.
    @pl.when(ki == qi)
    def _():
        o_parts = [acc_sc[h] * pl.reciprocal(l_sc[h], approx=True)
                   for h in range(H)]
        o_m = jnp.concatenate(o_parts, axis=-1).astype(bf16)      # (tq, C) head-major

        # merge-heads fused with c_proj at full contraction depth C
        a = jnp.dot(o_m, w_aproj_ref[...], preferred_element_type=f32) + b_aproj_ref[0]

        xt = x_ref[0].astype(f32)                                 # residual tile
        n = _layernorm(xt + a, g1_ref[0], b1_ref[0])

        hfc = _gelu(jnp.dot(n.astype(bf16), w_fc_ref[...],
                            preferred_element_type=f32) + b_fc_ref[0])   # (tq, 4C)
        mo = jnp.dot(hfc.astype(bf16), w_mproj_ref[...],
                     preferred_element_type=f32) + b_mproj_ref[0]        # (tq, C)

        o_ref[0] = _layernorm(n + mo, g2_ref[0], b2_ref[0]).astype(o_ref.dtype)


# --------------------------------- wrapper ------------------------------------

def _row_tile(T):
    # Returns (tile, padded_T). Large tiles amortize per-step overhead; non
    # 128-multiples of T are padded (the causal mask kills padded keys).
    if T % 256 == 0:
        return 256, T
    if T % 128 == 0:
        return 128, T
    if T <= 256 and T % 8 == 0:
        return T, T
    Tp = ((T + 127) // 128) * 128
    return 128, Tp


def _vmem_limit_bytes():
    # ~75% of physical VMEM, capped at 100 MiB (v5e/v6e: 96 MiB, v7x: 48 MiB).
    cap = 64 * 1024 * 1024
    try:
        cap = int(getattr(pltpu.get_tpu_info(), "vmem_capacity_bytes", cap))
    except Exception:
        pass
    return int(min(cap * 3 // 4, 100 * 1024 * 1024))


def block_forward(x, params, *, n_head, scale=False):
    B, T, C = x.shape
    D = C // n_head
    assert n_head * D == C
    tq, Tp = _row_tile(T)
    tk = tq
    NQ = Tp // tq
    NK = Tp // tk
    bf16, f32 = jnp.bfloat16, jnp.float32

    x_p = jnp.pad(x, ((0, 0), (0, Tp - T), (0, 0))) if Tp != T else x

    def r2(v):
        return v.reshape(1, -1).astype(f32)

    # weights in bf16 (HBM/VMEM savings, bf16 MXU path); biases / LN in f32
    w_attn = params['w_attn'].astype(bf16)                       # (C, 3C)
    b_attn = params['b_attn'].astype(f32)                        # (3C,)
    w_q = w_attn[:, :C]                                          # (C, C)
    b_q = b_attn[:C].reshape(1, C)
    w_kvT = jnp.transpose(w_attn[:, C:])                         # (2C, C), pre-transposed
    b_kvT = b_attn[C:].reshape(2 * C, 1)

    w_aproj = params['w_aproj'].astype(bf16)                     # (C, C)
    b_aproj = r2(params['b_aproj'])
    w_fc = params['w_fc'].astype(bf16)                           # (C, 4C)
    b_fc = r2(params['b_fc'])
    w_mproj = params['w_mproj'].astype(bf16)                     # (4C, C)
    b_mproj = r2(params['b_mproj'])
    g1, b1 = r2(params['g1']), r2(params['b1'])
    g2, b2 = r2(params['g2']), r2(params['b2'])

    vmem_limit = _vmem_limit_bytes()

    # ---- stage 1: row-tiled QKV projection, emitting attention layouts ----
    q, kT, vT = pl.pallas_call(
        qkv_proj_kernel,
        out_shape=(jax.ShapeDtypeStruct((B, Tp, C), bf16),       # Q  (natural)
                   jax.ShapeDtypeStruct((B, C, Tp), bf16),       # K^T (lane-dense T)
                   jax.ShapeDtypeStruct((B, C, Tp), bf16)),      # V^T (lane-dense T)
        grid=(B, NQ),
        in_specs=[pl.BlockSpec((1, tq, C), lambda b, i: (b, i, 0)),
                  pl.BlockSpec((C, C), lambda b, i: (0, 0)),
                  pl.BlockSpec((1, C), lambda b, i: (0, 0)),
                  pl.BlockSpec((2 * C, C), lambda b, i: (0, 0)),
                  pl.BlockSpec((2 * C, 1), lambda b, i: (0, 0))],
        out_specs=(pl.BlockSpec((1, tq, C), lambda b, i: (b, i, 0)),
                   pl.BlockSpec((1, C, tq), lambda b, i: (b, 0, i)),
                   pl.BlockSpec((1, C, tq), lambda b, i: (b, 0, i))),
        compiler_params=pltpu.CompilerParams(
            dimension_semantics=("parallel", "parallel"),
            vmem_limit_bytes=vmem_limit),
    )(x_p, w_q, b_q, w_kvT, b_kvT)

    args = (q, kT, vT, x_p,
            w_aproj, b_aproj, g1, b1, w_fc, b_fc, w_mproj, b_mproj, g2, b2)

    def const_spec(a):
        return pl.BlockSpec(a.shape, lambda b, i, k, _nd=a.ndim: (0,) * _nd)

    # TODO(synk): at GPT scale, additionally tile w_fc / w_mproj along their 4C
    # axis with an extra 'arbitrary' grid axis and use pipeline_mode=pl.Buffered(1)
    # on the constant-index weight specs to halve weight VMEM residency (v7x).
    in_specs = [
        pl.BlockSpec((1, tq, C), lambda b, i, k: (b, i, 0)),                    # q tile
        pl.BlockSpec((1, C, tk), lambda b, i, k: (b, 0, jnp.minimum(k, i))),    # K^T tile
        pl.BlockSpec((1, C, tk), lambda b, i, k: (b, 0, jnp.minimum(k, i))),    # V^T tile
        pl.BlockSpec((1, tq, C), lambda b, i, k: (b, i, 0)),                    # residual
    ] + [const_spec(a) for a in args[4:]]

    # ---- stage 2: flash-style causal attention + c_proj + LN1 + MLP + LN2 ----
    out = pl.pallas_call(
        functools.partial(attn_mlp_kernel, n_head=n_head, d_head=D, scale=scale),
        out_shape=jax.ShapeDtypeStruct((B, Tp, C), x.dtype),
        grid=(B, NQ, NK),
        in_specs=in_specs,
        out_specs=pl.BlockSpec((1, tq, C), lambda b, i, k: (b, i, 0)),
        scratch_shapes=[pltpu.VMEM((n_head, tq, 1), f32),    # running max
                        pltpu.VMEM((n_head, tq, 1), f32),    # running denom
                        pltpu.VMEM((n_head, tq, D), f32)],   # running numerator
        compiler_params=pltpu.CompilerParams(
            dimension_semantics=("parallel", "parallel", "arbitrary"),
            vmem_limit_bytes=vmem_limit),
    )(*args)

    return out[:, :T, :] if Tp != T else out


# ----------------------------- pure-JAX reference -----------------------------

def block_reference(x, params, *, n_head, scale=False):
    # Full-f32 reference matching the PyTorch `Block` semantics.
    B, T, C = x.shape
    D = C // n_head
    f32 = jnp.float32

    def ln(v, g, b, e=1e-5):
        u = v.mean(-1, keepdims=True)
        s = ((v - u) ** 2).mean(-1, keepdims=True)
        return g * ((v - u) / jnp.sqrt(s + e)) + b

    h = x @ params['w_attn'].astype(f32) + params['b_attn']
    q, k, v = jnp.split(h, 3, axis=-1)
    q = q.reshape(B, T, n_head, D).transpose(0, 2, 1, 3)
    k = k.reshape(B, T, n_head, D).transpose(0, 2, 3, 1)
    v = v.reshape(B, T, n_head, D).transpose(0, 2, 1, 3)
    w = jnp.matmul(q, k)
    if scale:
        w = w / math.sqrt(D)
    mask = jnp.tril(jnp.ones((T, T), f32))[None, None]
    w = w * mask + (-1e9) * (1.0 - mask)
    w = jax.nn.softmax(w, axis=-1)
    a = jnp.matmul(w, v).transpose(0, 2, 1, 3).reshape(B, T, C)
    a = a @ params['w_aproj'].astype(f32) + params['b_aproj']
    n = ln(x + a, params['g1'], params['b1'])
    z = n @ params['w_fc'].astype(f32) + params['b_fc']
    hfc = 0.5 * z * (1.0 + jnp.tanh(math.sqrt(2.0 / math.pi) * (z + 0.044715 * z ** 3)))
    m = hfc @ params['w_mproj'].astype(f32) + params['b_mproj']
    return ln(n + m, params['g2'], params['b2'])


# ------------------------------------ main -------------------------------------

if __name__ == "__main__":
    # small but lane-dense config: batch=2, seq=16, n_embd=128, n_head=4
    B, T, C, H = 2, 16, 128, 4
    key = jax.random.PRNGKey(0)
    ks = jax.random.split(key, 12)
    bf16 = jnp.bfloat16
    f32 = jnp.float32

    params = {
        # weight matrices stored in bf16 (as DMA'd / consumed by the kernel)
        'w_attn':  (jax.random.normal(ks[0], (C, 3 * C), f32) * 0.02).astype(bf16),
        'b_attn':  jax.random.normal(ks[1], (3 * C,), f32) * 0.02,
        'w_aproj': (jax.random.normal(ks[2], (C, C), f32) * 0.02).astype(bf16),
        'b_aproj': jax.random.normal(ks[3], (C,), f32) * 0.02,
        'g1':      1.0 + 0.1 * jax.random.normal(ks[4], (C,), f32),
        'b1':      0.1 * jax.random.normal(ks[5], (C,), f32),
        'w_fc':    (jax.random.normal(ks[6], (C, 4 * C), f32) * 0.02).astype(bf16),
        'b_fc':    jax.random.normal(ks[7], (4 * C,), f32) * 0.02,
        'w_mproj': (jax.random.normal(ks[8], (4 * C, C), f32) * 0.02).astype(bf16),
        'b_mproj': jax.random.normal(ks[9], (C,), f32) * 0.02,
        'g2':      1.0 + 0.1 * jax.random.normal(ks[10], (C,), f32),
        'b2':      0.1 * jax.random.normal(ks[11], (C,), f32),
    }

    x = jax.random.normal(jax.random.PRNGKey(1), (B, T, C), f32)

    out = block_forward(x, params, n_head=H, scale=True)   # TransformerModel uses scale=True
    out = jax.block_until_ready(out)

    ref = jax.block_until_ready(block_reference(x, params, n_head=H, scale=True))
    # bf16 matmul inputs (f32 accumulation) + approx reciprocal softmax vs. the
    # full-f32 reference -> tolerance ~1e-2.
    np.testing.assert_allclose(np.asarray(out, dtype=np.float32),
                               np.asarray(ref, dtype=np.float32),
                               rtol=1e-2, atol=1e-2)

    print("KERNEL_OK")
</pallas_src>

<mosaic_0001>
module attributes {stable_mosaic.version = 11 : i64} {
  func.func @qkv_proj_kernel(%arg0: i32, %arg1: i32, %arg2: memref<1x16x128xf32, #tpu.memory_space<vmem>>, %arg3: memref<128x128xbf16, #tpu.memory_space<vmem>>, %arg4: memref<1x128xf32, #tpu.memory_space<vmem>>, %arg5: memref<256x128xbf16, #tpu.memory_space<vmem>>, %arg6: memref<256x1xf32, #tpu.memory_space<vmem>>, %arg7: memref<1x16x128xbf16, #tpu.memory_space<vmem>>, %arg8: memref<1x128x16xbf16, #tpu.memory_space<vmem>>, %arg9: memref<1x128x16xbf16, #tpu.memory_space<vmem>>) attributes {dimension_semantics = [#tpu.dimension_semantics<parallel>, #tpu.dimension_semantics<parallel>], iteration_bounds = array<i64: 2, 1>, scalar_prefetch = 0 : i64, scratch_operands = 0 : i64, tpu.core_type = #tpu.core_type<tc>, window_params = [{transform_indices = @transform_0, window_bounds = array<i64: 1, 16, 128>}, {pipeline_mode = #tpu.pipeline_mode<synchronous>, transform_indices = @transform_1, window_bounds = array<i64: 128, 128>}, {pipeline_mode = #tpu.pipeline_mode<synchronous>, transform_indices = @transform_2, window_bounds = array<i64: 1, 128>}, {pipeline_mode = #tpu.pipeline_mode<synchronous>, transform_indices = @transform_3, window_bounds = array<i64: 256, 128>}, {pipeline_mode = #tpu.pipeline_mode<synchronous>, transform_indices = @transform_4, window_bounds = array<i64: 256, 1>}, {transform_indices = @transform_5, window_bounds = array<i64: 1, 16, 128>}, {transform_indices = @transform_6, window_bounds = array<i64: 1, 128, 16>}, {transform_indices = @transform_7, window_bounds = array<i64: 1, 128, 16>}]} {
    %c0 = arith.constant 0 : index
    %c0_0 = arith.constant 0 : index
    %c0_1 = arith.constant 0 : index
    %0 = vector.load %arg2[%c0, %c0_0, %c0_1] : memref<1x16x128xf32, #tpu.memory_space<vmem>>, vector<1x16x128xf32>
    %1 = vector.shape_cast %0 : vector<1x16x128xf32> to vector<16x128xf32>
    %2 = arith.truncf %1 : vector<16x128xf32> to vector<16x128xbf16>
    %c0_2 = arith.constant 0 : index
    %c0_3 = arith.constant 0 : index
    %3 = vector.load %arg3[%c0_2, %c0_3] : memref<128x128xbf16, #tpu.memory_space<vmem>>, vector<128x128xbf16>
    %cst = arith.constant dense<0.000000e+00> : vector<16x128xf32>
    %4 = tpu.matmul %2, %3, %cst {dimension_numbers = #tpu.dot_dimension_numbers<[1], [0], [0], [1], [0, 0, 1, 1], [], []>} : vector<16x128xbf16>, vector<128x128xbf16>, vector<16x128xf32> -> vector<16x128xf32>
    %c0_4 = arith.constant 0 : index
    %c0_5 = arith.constant 0 : index
    %5 = vector.load %arg4[%c0_4, %c0_5] : memref<1x128xf32, #tpu.memory_space<vmem>>, vector<1x128xf32>
    %6 = vector.shape_cast %5 : vector<1x128xf32> to vector<128xf32>
    %7 = vector.shape_cast %6 : vector<128xf32> to vector<1x128xf32>
    %8 = vector.broadcast %7 : vector<1x128xf32> to vector<16x128xf32>
    %9 = arith.addf %4, %8 : vector<16x128xf32>
    %10 = arith.truncf %9 : vector<16x128xf32> to vector<16x128xbf16>
    %c0_6 = arith.constant 0 : index
    %c0_7 = arith.constant 0 : index
    %c0_8 = arith.constant 0 : index
    %11 = vector.load %arg7[%c0_6, %c0_7, %c0_8] : memref<1x16x128xbf16, #tpu.memory_space<vmem>>, vector<1x16x128xbf16>
    %12 = vector.shape_cast %11 : vector<1x16x128xbf16> to vector<16x128xbf16>
    %13 = vector.shape_cast %10 : vector<16x128xbf16> to vector<1x16x128xbf16>
    tpu.vector_store %arg7[%c0_6, %c0_7, %c0_8], %13 {strides = array<i32>} : memref<1x16x128xbf16, #tpu.memory_space<vmem>>, vector<1x16x128xbf16>,
    %c0_9 = arith.constant 0 : index
    %c0_10 = arith.constant 0 : index
    %14 = vector.load %arg5[%c0_9, %c0_10] : memref<256x128xbf16, #tpu.memory_space<vmem>>, vector<256x128xbf16>
    %cst_11 = arith.constant dense<0.000000e+00> : vector<256x16xf32>
    %15 = tpu.matmul %14, %2, %cst_11 {dimension_numbers = #tpu.dot_dimension_numbers<[1], [1], [0], [0], [0, 0, 1, 0], [], []>} : vector<256x128xbf16>, vector<16x128xbf16>, vector<256x16xf32> -> vector<256x16xf32>
    %c0_12 = arith.constant 0 : index
    %c0_13 = arith.constant 0 : index
    %16 = vector.load %arg6[%c0_12, %c0_13] : memref<256x1xf32, #tpu.memory_space<vmem>>, vector<256x1xf32>
    %17 = vector.broadcast %16 : vector<256x1xf32> to vector<256x16xf32>
    %18 = arith.addf %15, %17 : vector<256x16xf32>
    %19 = arith.truncf %18 : vector<256x16xf32> to vector<256x16xbf16>
    %20 = vector.extract_strided_slice %19 {offsets = [0, 0], sizes = [128, 16], strides = [1, 1]} : vector<256x16xbf16> to vector<128x16xbf16>
    %c0_14 = arith.constant 0 : index
    %c0_15 = arith.constant 0 : index
    %c0_16 = arith.constant 0 : index
    %21 = vector.load %arg8[%c0_14, %c0_15, %c0_16] : memref<1x128x16xbf16, #tpu.memory_space<vmem>>, vector<1x128x16xbf16>
    %22 = vector.shape_cast %21 : vector<1x128x16xbf16> to vector<128x16xbf16>
    %23 = vector.shape_cast %20 : vector<128x16xbf16> to vector<1x128x16xbf16>
    tpu.vector_store %arg8[%c0_14, %c0_15, %c0_16], %23 {strides = array<i32>} : memref<1x128x16xbf16, #tpu.memory_space<vmem>>, vector<1x128x16xbf16>,
    %24 = vector.extract_strided_slice %19 {offsets = [128, 0], sizes = [128, 16], strides = [1, 1]} : vector<256x16xbf16> to vector<128x16xbf16>
    %c0_17 = arith.constant 0 : index
    %c0_18 = arith.constant 0 : index
    %c0_19 = arith.constant 0 : index
    %25 = vector.load %arg9[%c0_17, %c0_18, %c0_19] : memref<1x128x16xbf16, #tpu.memory_space<vmem>>, vector<1x128x16xbf16>
    %26 = vector.shape_cast %25 : vector<1x128x16xbf16> to vector<128x16xbf16>
    %27 = vector.shape_cast %24 : vector<128x16xbf16> to vector<1x128x16xbf16>
    tpu.vector_store %arg9[%c0_17, %c0_18, %c0_19], %27 {strides = array<i32>} : memref<1x128x16xbf16, #tpu.memory_space<vmem>>, vector<1x128x16xbf16>,
    return
  }
  func.func @transform_0(%arg0: i32, %arg1: i32) -> (i32, i32, i32) {
    %c0_i32 = arith.constant 0 : i32
    %c0_i32_0 = arith.constant 0 : i32
    return %arg0, %arg1, %c0_i32 : i32, i32, i32
  }
  func.func @transform_1(%arg0: i32, %arg1: i32) -> (i32, i32) {
    %c0_i32 = arith.constant 0 : i32
    %c0_i32_0 = arith.constant 0 : i32
    %c0_i32_1 = arith.constant 0 : i32
    return %c0_i32, %c0_i32_0 : i32, i32
  }
  func.func @transform_2(%arg0: i32, %arg1: i32) -> (i32, i32) {
    %c0_i32 = arith.constant 0 : i32
    %c0_i32_0 = arith.constant 0 : i32
    %c0_i32_1 = arith.constant 0 : i32
    return %c0_i32, %c0_i32_0 : i32, i32
  }
  func.func @transform_3(%arg0: i32, %arg1: i32) -> (i32, i32) {
    %c0_i32 = arith.constant 0 : i32
    %c0_i32_0 = arith.constant 0 : i32
    %c0_i32_1 = arith.constant 0 : i32
    return %c0_i32, %c0_i32_0 : i32, i32
  }
  func.func @transform_4(%arg0: i32, %arg1: i32) -> (i32, i32) {
    %c0_i32 = arith.constant 0 : i32
    %c0_i32_0 = arith.constant 0 : i32
    %c0_i32_1 = arith.constant 0 : i32
    return %c0_i32, %c0_i32_0 : i32, i32
  }
  func.func @transform_5(%arg0: i32, %arg1: i32) -> (i32, i32, i32) {
    %c0_i32 = arith.constant 0 : i32
    %c0_i32_0 = arith.constant 0 : i32
    return %arg0, %arg1, %c0_i32 : i32, i32, i32
  }
  func.func @transform_6(%arg0: i32, %arg1: i32) -> (i32, i32, i32) {
    %c0_i32 = arith.constant 0 : i32
    %c0_i32_0 = arith.constant 0 : i32
    return %arg0, %c0_i32, %arg1 : i32, i32, i32
  }
  func.func @transform_7(%arg0: i32, %arg1: i32) -> (i32, i32, i32) {
    %c0_i32 = arith.constant 0 : i32
    %c0_i32_0 = arith.constant 0 : i32
    return %arg0, %c0_i32, %arg1 : i32, i32, i32
  }
}

</mosaic_0001>

<bundles_post_ra>
// kernel: tpu_custom_call.1
= control target key start
LH: loop header
LB: loop body
LE: loop exit
PB: predicated region body
PF: predicated region fallthrough
CT: control target
= control target key end

     0   :  { %13 = vsyncpa [#allocation3], 0  ;;  %s2139_s0 = inlined_call_operand.vmem [shape: f32[2,16,128], index: 0, kind: input, shape index: {}]   ;;  %s2140_s1 = inlined_call_operand.vmem [shape: bf16[128,128], index: 1, kind: input, shape index: {}]   ;;  %s2141_s2 = inlined_call_operand.vmem [shape: f32[1,128], index: 2, kind: input, shape index: {}]   ;;  %s2142_s3 = inlined_call_operand.vmem [shape: bf16[256,128], index: 3, kind: input, shape index: {}]   ;;  %s2143_s4 = inlined_call_operand.vmem [shape: f32[256,1], index: 4, kind: input, shape index: {}]   ;;  %s2144_s5 = inlined_call_operand.hbm [shape: bf16[2,16,128], index: 5, kind: output, shape index: {0}]   ;;  %s2145_s6 = inlined_call_operand.vmem [shape: bf16[2,128,16], index: 6, kind: output, shape index: {1}]   ;;  %s2146_s7 = inlined_call_operand.vmem [shape: bf16[2,128,16], index: 7, kind: output, shape index: {2}]  }
   0x1   :  { %15 = vsyncpa [#allocation3 + $0x1], 0  ;;  %s1717_s24 = smov 0   ;;  %s1719_s25 = smov 0  }
   0x2   :  { %s1721_s26 = smov 0   ;;  %s1723_s27 = smov 0  }
   0x3   :  { %s1725_s28 = smov 0   ;;  %s1727_s29 = smov 0  }
   0x4 LB: > { %s1306_s30 = sadd.s32 4294967295, %s1669_s29   ;;  %s1307_s8 = sadd.s32 4294967294, %s1669_s29   ;;  %s1669_s29 = sphi %s1727_s29, %s21_s29   ;;  %s1665_s28 = sphi %s1725_s28, %s2153_s28   ;;  %s1661_s27 = sphi %s1723_s27, %s2152_s27   ;;  %s1657_s26 = sphi %s1721_s26, %s2151_s26   ;;  %s1653_s25 = sphi %s1719_s25, %s2150_s25   ;;  %s1649_s24 = sphi %s1717_s24, %s2149_s24  }
   0x5   : > { %s33_s9 = sadd.s32 1, %s1665_s28  ;;  %s154_s10 = sadd.s32 1, %s1657_s26 }
   0x6   : > { %p35_p0 = scmp.ge.s32.totalorder %s33_s9, 2  ;;  %p164_p1 = scmp.ne.s32.totalorder %s1657_s26, %s1653_s25 }
   0x7   : > { %p165_p2 = scmp.eq.s32.totalorder %s1306_s30, 1  ;;  %p170_p3 = scmp.ne.s32.totalorder %s1653_s25, %s1649_s24 }
   0x8   : > { %s2155_s9 = smov (%p35_p0, %s33_s9), 0  ;;  %p171_p5 = scmp.eq.s32.totalorder %s1307_s8, 1 }
   0x9   : > { %p1757_p4 = por %p165_p2, %p164_p1  ;;  %s149_s12 = ssub.s32 %s1665_s28, %s2155_s9 }
   0xa   : > { %p1310_p6 = scmp.ge.s32.totalorder %s1669_s29, 1  ;;  %p152_p7 = scmp.eq.s32.totalorder %s149_s12, 0 }
   0xb   : > { %p1764_p8 = por %p171_p5, %p170_p3  ;;  %p270_p9 = scmp.lt.s32.totalorder %s1669_s29, 3 }
   0xc   : > { %s1770_s14 = scalar_select %p152_p7, %s1657_s26, %s154_s10  }
   0xd   : > { %p271_p10 = pnand %p1310_p6, %p270_p9 }
   0xe   : > { %p323_p11 = scmp.lt.s32.totalorder (!%p271_p10), %s1661_s27, 1  ;;  %s299_s16 = sand.u32 (!%p271_p10), 1, %s1653_s25  }
   0xf   : > { %274 = sbr.rel (%p271_p10) target bundleno = 293 (0x125), region = 40  ;;  %s1419_s10 = sshll.u32 (!%p271_p10), %s1661_s27, 7 }
  0x10   : > { %s1674_s18 = smov (!%p271_p10), [#allocation2]  }
  0x11   : > { %s1597_s20 = sshll.u32 (!%p271_p10), %s1674_s18, 4  ;;  %s1598_s20 = int_to_ptr.vmem [resolvable:$false] %s1597_s20 }
  0x12   : > { %s1599_s21 = scalar_lea.vmem (!%p271_p10), %s1598_s20, 256 }
  0x14   : > { %v1569_v0 = vld [vmem:[%s2140_s1 + $0x38] sm:$0xff]   ;;  %v1671_v1 = vmov 0.0   ;;  %v1570_v2 = vld [vmem:[%s2140_s1 + $0x30] sm:$0xff]   ;;  %s1782_s19 = scalar_select %p323_p11, %s1661_s27, 1  ;;  %v1672_v3 = vmov 0   ;;  %v507_v5 = vld [vmem:[%s2143_s4] sm:$0xff] }
  0x15   : > { %1451 = vmatprep.subr.bf16.mxu0 %v1671_v1  ;;  %1568 = vset.pattern.permute.xlu1 %v1672_v3  ;;  %v509_v4 = vld [vmem:[%s2143_s4 + $0x10] sm:$0xff]  ;;  %v1571_v6 = vld [vmem:[%s2140_s1 + $0x28] sm:$0xff]   ;;  %v510_v7 = vld [vmem:[%s2143_s4 + $0x18] sm:$0xff]  ;;  %vm1673_vm0 = vmmov 0   ;;  %vm1028_vm1 = vcmask 125952  }
  0x16   : > { %1452 = vmatpush3.bf16.msra.mxu0 %v1569_v0  ;;  %1567 = vset.pattern.permute.xlu0 %v1672_v3  ;;  %s1382_s15 = sshll.u32 %s1782_s19, 4  ;;  %v508_v8 = vld [vmem:[%s2143_s4 + $0x8] sm:$0xff]  ;;  %v1573_v9 = vld [vmem:[%s2142_s3 + $0x20] sm:$0xff]   ;;  %v514_v16 = vld [vmem:[%s2143_s4 + $0x38] sm:$0xff]  ;;  %s1383_s30 = sshll.u32 %s1782_s19, 6 }
  0x17   : > { %1453 = vmatprep.subr.bf16.mxu0 %v1671_v1  ;;  %551 = vperm.xlu1 %1568, %v509_v4   ;;  %s330_s23 = scalar_lea.vmem %s2139_s0, %s1382_s15  ;;  %v512_v13 = vld [vmem:[%s2143_s4 + $0x28] sm:$0xff]  ;;  %v1572_v14 = vld [vmem:[%s2140_s1 + $0x20] sm:$0xff]   ;;  %v1575_v18 = vld [vmem:[%s2140_s1 + $0x18] sm:$0xff]   ;;  %s1979_s12 = scalar_lea.vmem %s2145_s6, %s1383_s30 }
  0x18   : > { %541 = vperm.xlu0 %1567, %v507_v5   ;;  %1467 = vmatprep.mubr.msk.bf16.mxu0 %vm1673_vm0, %v1671_v1  ;;  %v350_v10 = vld [vmem:[%s330_s23] sm:$0xff]  ;;  %v351_v11 = vld [vmem:[%s330_s23 + $0x8] sm:$0xff]  ;;  %v513_v19 = vld [vmem:[%s2143_s4 + $0x30] sm:$0xff]  ;;  %s2000_s15 = sshll.u32 %s299_s16, 3  ;;  %s2012_s22 = scalar_lea.vmem %s2146_s7, %s1383_s30 }
  0x19   : > { %1481 = vmatprep.mubr.bf16.mxu1 %v1573_v9  ;;  %v352_v12 = vpack.c.bf16 %v351_v11, %v350_v10  ;;  %v511_v15 = vld [vmem:[%s2143_s4 + $0x20] sm:$0xff]  ;;  %v1574_v17 = vld [vmem:[%s2142_s3 + $0x28] sm:$0xff]   ;;  %v1577_v20 = vld [vmem:[%s2142_s3 + $0x30] sm:$0xff]   ;;  %s301_s23 = scalar_lea.vmem [#allocation2], %s2000_s15  ;;  %s2029_s30 = scalar_lea.hbm %s2144_s5, %s1419_s10 }
  0x1a   : > { %1454 = vmatpush3.bf16.msra.mxu0 %v1570_v2  ;;  %v516_v21 = vld [vmem:[%s2143_s4 + $0x48] sm:$0xff]  ;;  %v1576_v22 = vld [vmem:[%s2140_s1 + $0x10] sm:$0xff]   ;;  %v515_v23 = vld [vmem:[%s2143_s4 + $0x40] sm:$0xff]  ;;  %s1149_s8 = sshll.u32 %s301_s23, 4  ;;  %s2041_s15 = scalar_lea.sflag [#allocation3], %s299_s16  ;;  %s2024_s8 = int_to_ptr.vmem [resolvable:$true] %s1149_s8 }
  0x1b   : > { %1455 = vmatprep.subr.bf16.mxu0 %v1671_v1  ;;  %556 = vperm.xlu1 %1568, %v510_v7   ;;  %v1578_v24 = vld [vmem:[%s2142_s3 + $0x38] sm:$0xff]   ;;  %v1579_v25 = vld [vmem:[%s2140_s1 + $0x8] sm:$0xff]   ;;  %v517_v27 = vld [vmem:[%s2143_s4 + $0x50] sm:$0xff]  ;;  %s1593_s17 = scalar_lea.vmem %s2024_s8, 128  ;;  %p1600_p1 = scmp.lt.s32.totalorder %s2024_s8, %s1598_s20 }
  0x1c   : > { %546 = vperm.xlu0 %1567, %v508_v8   ;;  %1505 = vmatprep.subr.bf16.mxu1 %v352_v12  ;;  %v518_v26 = vld [vmem:[%s2143_s4 + $0x58] sm:$0xff]  ;;  %v1581_v28 = vld [vmem:[%s2142_s3 + $0x40] sm:$0xff]   ;;  %v520_v30 = vld [vmem:[%s2143_s4 + $0x68] sm:$0xff]  ;;  %p1594_p12 = scmp.ne.s32.totalorder %s2024_s8, %s1593_s17  ;;  %p1601_p2 = scmp.lt.s32.totalorder %s1599_s21, %s1593_s17 }
  0x1d   : > { %1506 = vmatpush3.bf16.xpose.msra.mxu1 %v352_v12  ;;  %v1580_v29 = vld [vmem:[%s2140_s1] sm:$0xff]   ;;  %v1582_v32 = vld [vmem:[%s2142_s3 + $0x48] sm:$0xff]   ;;  %v522_v33 = vld [vmem:[%s2143_s4 + $0x78] sm:$0xff] }
  0x1e   : > { %1456 = vmatpush3.bf16.msra.mxu0 %v1571_v6  ;;  %v519_v31 = vld [vmem:[%s2143_s4 + $0x60] sm:$0xff]  ;;  %v521_v34 = vld [vmem:[%s2143_s4 + $0x70] sm:$0xff]  ;;  %v524_v37 = vld [vmem:[%s2143_s4 + $0x88] sm:$0xff]  ;;  %p1595_p13 = pnand %p1594_p12, %p1757_p4  ;;  %p1602_p3 = por %p1601_p2, %p1600_p1 }
  0x1f   : > { %1457 = vmatprep.subr.bf16.mxu0 %v1671_v1  ;;  %566 = vperm.xlu1 %1568, %v512_v13   ;;  %v1583_v35 = vld [vmem:[%s2142_s3 + $0x50] sm:$0xff]   ;;  %v1584_v36 = vld [vmem:[%s2142_s3] sm:$0xff]   ;;  %v1586_v39 = vld [vmem:[%s2142_s3 + $0x8] sm:$0xff]  }
  0x20   : > { %561 = vperm.xlu0 %1567, %v511_v15   ;;  %v523_v38 = vld [vmem:[%s2143_s4 + $0x80] sm:$0xff]  ;;  %v526_v40 = vld [vmem:[%s2143_s4 + $0x98] sm:$0xff]  ;;  %v525_v42 = vld [vmem:[%s2143_s4 + $0x90] sm:$0xff]  ;;  %p1596_p0 = pneg %p1595_p13 }
  0x21   : > { %v1585_v41 = vld [vmem:[%s2142_s3 + $0x58] sm:$0xff]   ;;  %v1588_v43 = vld [vmem:[%s2142_s3 + $0x10] sm:$0xff]   ;;  %v1587_v44 = vld [vmem:[%s2142_s3 + $0x60] sm:$0xff]  }
  0x22   : > { %1458 = vmatpush3.bf16.msra.mxu0 %v1572_v14  ;;  %v528_v45 = vld [vmem:[%s2143_s4 + $0xa8] sm:$0xff]  ;;  %v527_v46 = vld [vmem:[%s2143_s4 + $0xa0] sm:$0xff]  ;;  %v1590_v47 = vld [vmem:[%s2142_s3 + $0x18] sm:$0xff]   ;;  %p1603_p5 = pnand %p1602_p3, %p1596_p0 }
  0x23   : > { %1459 = vmatprep.subr.bf16.mxu0 %v1671_v1  ;;  %576 = vperm.xlu1 %1568, %v514_v16   ;;  %v530_v48 = vld [vmem:[%s2143_s4 + $0xb8] sm:$0xff]  ;;  %v1589_v49 = vld [vmem:[%s2142_s3 + $0x68] sm:$0xff]   ;;  %v529_v50 = vld [vmem:[%s2143_s4 + $0xb0] sm:$0xff] }
  0x24   : > { %571 = vperm.xlu0 %1567, %v513_v19   ;;  %1482 = vmatmul.mubr.bf16.vlgmr.msra.gmra.mxu1 %v1574_v17  ;;  %v1591_v51 = vld [vmem:[%s2142_s3 + $0x70] sm:$0xff]   ;;  %v532_v52 = vld [vmem:[%s2143_s4 + $0xc8] sm:$0xff]  ;;  %v531_v53 = vld [vmem:[%s2143_s4 + $0xc0] sm:$0xff] }
  0x25   : > { %1485 = vmatprep.mubr.bf16.mxu1 %v1577_v20  ;;  %v534_v54 = vld [vmem:[%s2143_s4 + $0xd8] sm:$0xff]  ;;  %v533_v56 = vld [vmem:[%s2143_s4 + $0xd0] sm:$0xff]  ;;  %v536_v57 = vld [vmem:[%s2143_s4 + $0xe8] sm:$0xff] }
  0x26   : > { %1460 = vmatpush3.bf16.msra.mxu0 %v1575_v18  ;;  %v1592_v55 = vld [vmem:[%s2142_s3 + $0x78] sm:$0xff]   ;;  %v535_v58 = vld [vmem:[%s2143_s4 + $0xe0] sm:$0xff]  ;;  %v537_v60 = vld [vmem:[%s2143_s4 + $0xf0] sm:$0xff] }
  0x27   : > { %1461 = vmatprep.subr.bf16.mxu0 %v1671_v1  ;;  %586 = vperm.xlu1 %1568, %v516_v21   ;;  %v538_v59 = vld [vmem:[%s2143_s4 + $0xf8] sm:$0xff] }
  0x28   : > { %581 = vperm.xlu0 %1567, %v515_v23  }
  0x2a   : > { %1462 = vmatpush3.bf16.msra.mxu0 %v1576_v22 }
  0x2b   : > { %1463 = vmatprep.subr.bf16.mxu0 %v1671_v1  ;;  %596 = vperm.xlu1 %1568, %v518_v26  }
  0x2c   : > { %591 = vperm.xlu0 %1567, %v517_v27   ;;  %1486 = vmatmul.mubr.bf16.gmra.mxu1 %v1578_v24 }
  0x2d   : > { %1489 = vmatprep.mubr.bf16.mxu1 %v1581_v28 }
  0x2e   : > { %1464 = vmatpush3.bf16.msra.mxu0 %v1579_v25 }
  0x2f   : > { %1465 = vmatprep.subr.bf16.mxu0 %v1671_v1  ;;  %606 = vperm.xlu1 %1568, %v520_v30  }
  0x30   : > { %601 = vperm.xlu0 %1567, %v519_v31  }
  0x32   : > { %1466 = vmatpush3.bf16.msra.mxu0 %v1580_v29 }
  0x33   : > { %1471 = vmatprep.subr.bf16.mxu0 %v352_v12  ;;  %616 = vperm.xlu1 %1568, %v522_v33  }
  0x34   : > { %611 = vperm.xlu0 %1567, %v521_v34   ;;  %1490 = vmatmul.mubr.bf16.gmra.mxu1 %v1582_v32 }
  0x35   : > { %1468 = vmatmul.mubr.bf16.vlgmr.msra.gmra.mxu0 %v352_v12  ;;  %1493 = vmatprep.mubr.bf16.mxu1 %v1583_v35 }
  0x36   : > { %1472 = vmatpush3.bf16.xpose.msra.mxu0 %v352_v12  ;;  %1473 = vmatprep.mubr.bf16.mxu0 %v1584_v36 }
  0x37   : > { %626 = vperm.xlu1 %1568, %v524_v37  }
  0x38   : > { %621 = vperm.xlu0 %1567, %v523_v38  }
  0x3b   : > { %636 = vperm.xlu1 %1568, %v526_v40  }
  0x3c   : > { %631 = vperm.xlu0 %1567, %v525_v42   ;;  %1494 = vmatmul.mubr.bf16.gmra.mxu1 %v1585_v41  ;;  %v1318_v42 = vld [vmem:[%s2141_s2] ss:$0 sm:$0xff] }
  0x3d   : > { %1474 = vmatmul.mubr.bf16.vlgmr.msra.gmra.mxu0 %v1586_v39  ;;  %1497 = vmatprep.mubr.bf16.mxu1 %v1587_v44 }
  0x3e   : > { %1477 = vmatprep.mubr.bf16.mxu0 %v1588_v43 }
  0x3f   : > { %646 = vperm.xlu1 %1568, %v528_v45  }
  0x40   : > { %641 = vperm.xlu0 %1567, %v527_v46  }
  0x43   : > { %656 = vperm.xlu1 %1568, %v530_v48  }
  0x44   : > { %651 = vperm.xlu0 %1567, %v529_v50   ;;  %1498 = vmatmul.mubr.bf16.gmra.mxu1 %v1589_v49 }
  0x45   : > { %1478 = vmatmul.mubr.bf16.gmra.mxu0 %v1590_v47  ;;  %1501 = vmatprep.mubr.bf16.mxu1 %v1591_v51 }
  0x47   : > { %666 = vperm.xlu1 %1568, %v532_v52  }
  0x48   : > { %661 = vperm.xlu0 %1567, %v531_v53  }
  0x4b   : > { %676 = vperm.xlu1 %1568, %v534_v54  }
  0x4c   : > { %671 = vperm.xlu0 %1567, %v533_v56   ;;  %1502 = vmatmul.mubr.bf16.gmra.mxu1 %v1592_v55 }
  0x4f   : > { %686 = vperm.xlu1 %1568, %v536_v57  }
  0x50   : > { %681 = vperm.xlu0 %1567, %v535_v58  }
  0x53   : > { %696 = vperm.xlu1 %1568, %v538_v59  }
  0x54   : > { %691 = vperm.xlu0 %1567, %v537_v60  }
  0x92   : > { %v1959_v62 = vpop.permute.xlu1 %551 }
  0x93   : > { %v1957_v61 = vpop.permute.xlu0 %541 }
  0x96   : > { %v1963_v0 = vpop.permute.xlu1 %556 }
  0x97   : > { %v1961_v63 = vpop.permute.xlu0 %546 }
  0x9a   : > { %v1967_v2 = vpop.permute.xlu1 %566 }
  0x9b   : > { %v1965_v1 = vpop.permute.xlu0 %561 }
  0x9e   : > { %v1971_v4 = vpop.permute.xlu1 %576 }
  0x9f   : > { %v1969_v3 = vpop.permute.xlu0 %571 }
  0xa2   : > { %v587_v6 = vpop.permute.xlu1 %586 }
  0xa3   : > { %v582_v5 = vpop.permute.xlu0 %581 }
  0xa6   : > { %v597_v8 = vpop.permute.xlu1 %596 }
  0xa7   : > { %v592_v7 = vpop.permute.xlu0 %591 }
  0xaa   : > { %v607_v10 = vpop.permute.xlu1 %606 }
  0xab   : > { %v602_v9 = vpop.permute.xlu0 %601 }
  0xae   : > { %v617_v12 = vpop.permute.xlu1 %616 }
  0xaf   : > { %v612_v11 = vpop.permute.xlu0 %611 }
  0xb2   : > { %v1981_v16 = vpop.permute.xlu1 %626 }
  0xb3   : > { %v622_v13 = vpop.permute.xlu0 %621 }
  0xb6   : > { %v637_v27 = vpop.permute.xlu1 %636 }
  0xb7   : > { %v632_v20 = vpop.permute.xlu0 %631 }
  0xba   : > { %v1996_v38 = vpop.permute.xlu1 %646 }
  0xbb   : > { %v1989_v31 = vpop.permute.xlu0 %641 }
  0xbe   : > { %v2020_v54 = vpop.permute.xlu1 %656 }
  0xbf   : > { %v652_v44 = vpop.permute.xlu0 %651 }
  0xc3   : > { %v2031_v60 = vpop.permute.xlu0 %661 }
  0xe4   : > { %v1483_v14 = vpop.f32.mrf.mxu1 }
  0xe5   : > { %v870_v15 = vadd.f32 %v1483_v14, %v592_v7 }
  0xe6   : > { %v861_v17 = vpop.f32.mrf.mxu1 }
  0xe7   : > { %v1397_v18 = vpack.c.bf16 %v870_v15, %v870_v15  ;;  %v862_v19 = vadd.f32 %v861_v17, %v582_v5 }
  0xe8   : > { %v1484_v21 = vpop.f32.mrf.mxu1 }
  0xe9   : > { %1039 = vst.msk [vmem:[%s1979_s12 + $0x28] sm:$0xf] %vm1028_vm1, %v1397_v18  ;;  %v1395_v22 = vpack.c.bf16 %v862_v19, %v862_v19  ;;  %v873_v23 = vadd.f32 %v1484_v21, %v597_v8 }
  0xea   : > { %v864_v24 = vpop.f32.mrf.mxu1 }
  0xeb   : > { %1037 = vst.msk [vmem:[%s1979_s12 + $0x20] sm:$0xf] %vm1028_vm1, %v1395_v22  ;;  %v1398_v25 = vpack.c.bf16 %v873_v23, %v873_v23  ;;  %v865_v26 = vadd.f32 %v864_v24, %v587_v6 }
  0xec   : > { %v1487_v28 = vpop.f32.mrf.mxu1 }
  0xed   : > { %1040 = vst.msk [vmem:[%s1979_s12 + $0x2c] sm:$0xf] %vm1028_vm1, %v1398_v25  ;;  %v1396_v29 = vpack.c.bf16 %v865_v26, %v865_v26  ;;  %v886_v30 = vadd.f32 %v1487_v28, %v612_v11 }
  0xee   : > { %v877_v32 = vpop.f32.mrf.mxu1 }
  0xef   : > { %1038 = vst.msk [vmem:[%s1979_s12 + $0x24] sm:$0xf] %vm1028_vm1, %v1396_v29  ;;  %v1401_v33 = vpack.c.bf16 %v886_v30, %v886_v30  ;;  %v878_v34 = vadd.f32 %v877_v32, %v602_v9 }
  0xf0   : > { %v1488_v35 = vpop.f32.mrf.mxu1 }
  0xf1   : > { %1043 = vst.msk [vmem:[%s1979_s12 + $0x38] sm:$0xf] %vm1028_vm1, %v1401_v33  ;;  %v1399_v36 = vpack.c.bf16 %v878_v34, %v878_v34  ;;  %v889_v37 = vadd.f32 %v1488_v35, %v617_v12 }
  0xf2   : > { %v880_v39 = vpop.f32.mrf.mxu1 }
  0xf3   : > { %1041 = vst.msk [vmem:[%s1979_s12 + $0x30] sm:$0xf] %vm1028_vm1, %v1399_v36  ;;  %v1402_v40 = vpack.c.bf16 %v889_v37, %v889_v37  ;;  %v881_v41 = vadd.f32 %v880_v39, %v607_v10 }
  0xf4   : > { %v1491_v45 = vpop.f32.mrf.mxu1 }
  0xf5   : > { %v458_v43 = vpop.f32.mrf.mxu0  ;;  %1044 = vst.msk [vmem:[%s1979_s12 + $0x3c] sm:$0xf] %vm1028_vm1, %v1402_v40  ;;  %v1400_v46 = vpack.c.bf16 %v881_v41, %v881_v41  ;;  %v902_v47 = vadd.f32 %v1491_v45, %v632_v20 }
  0xf6   : > { %v459_v49 = vadd.f32 %v1318_v42, %v458_v43  ;;  %v893_v50 = vpop.f32.mrf.mxu1 }
  0xf7   : > { %v1469_v48 = vpop.f32.mrf.mxu0  ;;  %1042 = vst.msk [vmem:[%s1979_s12 + $0x34] sm:$0xf] %vm1028_vm1, %v1400_v46  ;;  %v1405_v51 = vpack.c.bf16 %v902_v47, %v902_v47  ;;  %v894_v52 = vadd.f32 %v893_v50, %v622_v13 }
  0xf8   : > { %v1492_v55 = vpop.f32.mrf.mxu1 }
  0xf9   : > { %v461_v53 = vpop.f32.mrf.mxu0  ;;  %1103 = vst.msk [vmem:[%s2012_s22 + $0x8] sm:$0xf] %vm1028_vm1, %v1405_v51  ;;  %v1403_v57 = vpack.c.bf16 %v894_v52, %v894_v52  ;;  %v905_v58 = vadd.f32 %v1492_v55, %v637_v27 }
  0xfa   : > { %v462_v56 = vadd.f32 %v1318_v42, %v461_v53  ;;  %v896_v6 = vpop.f32.mrf.mxu1 }
  0xfb   : > { %v1470_v59 = vpop.f32.mrf.mxu0  ;;  %1101 = vst.msk [vmem:[%s2012_s22] sm:$0xf] %vm1028_vm1, %v1403_v57  ;;  %v1406_v7 = vpack.c.bf16 %v905_v58, %v905_v58  ;;  %v897_v8 = vadd.f32 %v896_v6, %v1981_v16 }
  0xfc   : > { %v1423_v5 = vpack.c.bf16 %v462_v56, %v459_v49  ;;  %v1495_v10 = vpop.f32.mrf.mxu1 }
  0xfd   : > { %v1475_v9 = vpop.f32.mrf.mxu0  ;;  %1104 = vst.msk [vmem:[%s2012_s22 + $0xc] sm:$0xf] %vm1028_vm1, %v1406_v7  ;;  %v1404_v12 = vpack.c.bf16 %v897_v8, %v897_v8  ;;  %v918_v13 = vadd.f32 %v1495_v10, %v652_v44 }
  0xfe   : > { %1424 = vst [vmem:[%s301_s23] sm:$0xff] %v1423_v5   ;;  %v838_v11 = vadd.f32 %v1475_v9, %v1959_v62 }
  0xff   : > { %v829_v14 = vpop.f32.mrf.mxu0 }
 0x100   : > { %1606 = shalt.err (!%p1603_p5)
}
 0x101   : > { %s1607_s16 = scalar_lea.hbm %s2029_s30, 128  ;;  %s1611_s19 = scalar_lea.hbm %s2144_s5, 256 }
 0x102   : > { %p1608_p6 = scmp.ne.s32.totalorder %s2029_s30, %s1607_s16  ;;  %p1612_p10 = scmp.lt.s32.totalorder %s2029_s30, %s2144_s5 }
 0x103   : > { %p1613_p11 = scmp.lt.s32.totalorder %s1611_s19, %s1607_s16 }
 0x104   : > { %p1609_p7 = pnand %p1608_p6, %p1757_p4 }
 0x105   : > { %p1614_p12 = por %p1613_p11, %p1612_p10 }
 0x106   : > { %p1610_p9 = pneg %p1609_p7 }
 0x108   : > { %p1615_p13 = pnand %p1614_p12, %p1610_p9 }
 0x10a   : > { %1618 = shalt.err (!%p1615_p13)
}
 0x10b   : > { %s1675_s17 = smov 64   ;;  %s1676_s20 = smov 4   ;;  %v667_v62 = vpop.permute.xlu1 %666  ;;  %v1389_v15 = vpack.c.bf16 %v838_v11, %v838_v11  ;;  %v909_v16 = vpop.f32.mrf.mxu1  ;;  %v830_v17 = vadd.f32 %v829_v14, %v1957_v61  ;;  %1102 = vst.msk [vmem:[%s2012_s22 + $0x4] sm:$0xf] %vm1028_vm1, %v1404_v12  ;;  %v1409_v18 = vpack.c.bf16 %v918_v13, %v918_v13 }
 0x10c   : > { %1507 = dma.vmem_to_hbm [thread:$0]  (%p1757_p4), %s2024_s8, 128, %s2029_s30, %s2041_s15, %s1675_s17, %s1675_s17, %s1676_s20   ;;  %v910_v19 = vadd.f32 %v909_v16, %v1989_v31  ;;  %v1476_v20 = vpop.f32.mrf.mxu0  ;;  %v672_v21 = vpop.permute.xlu0 %671 }
 0x10d   : > { %1031 = vst.msk [vmem:[%s1979_s12 + $0x8] sm:$0xf] %vm1028_vm1, %v1389_v15  ;;  %v1387_v22 = vpack.c.bf16 %v830_v17, %v830_v17  ;;  %v1496_v23 = vpop.f32.mrf.mxu1  ;;  %v841_v24 = vadd.f32 %v1476_v20, %v1963_v0  ;;  %1107 = vst.msk [vmem:[%s2012_s22 + $0x18] sm:$0xf] %vm1028_vm1, %v1409_v18 }
 0x10e   : > { %v1407_v25 = vpack.c.bf16 %v910_v19, %v910_v19  ;;  %v921_v61 = vadd.f32 %v1496_v23, %v2020_v54  ;;  %v832_v26 = vpop.f32.mrf.mxu0 }
 0x10f   : > { %1029 = vst.msk [vmem:[%s1979_s12] sm:$0xf] %vm1028_vm1, %v1387_v22  ;;  %v1390_v27 = vpack.c.bf16 %v841_v24, %v841_v24  ;;  %v912_v28 = vpop.f32.mrf.mxu1  ;;  %v833_v29 = vadd.f32 %v832_v26, %v1961_v63  ;;  %v677_v32 = vpop.permute.xlu1 %676 }
 0x110   : > { %1105 = vst.msk [vmem:[%s2012_s22 + $0x10] sm:$0xf] %vm1028_vm1, %v1407_v25  ;;  %v1410_v30 = vpack.c.bf16 %v921_v61, %v921_v61  ;;  %v913_v31 = vadd.f32 %v912_v28, %v1996_v38  ;;  %v1479_v0 = vpop.f32.mrf.mxu0  ;;  %v682_v39 = vpop.permute.xlu0 %681 }
 0x111   : > { %1032 = vst.msk [vmem:[%s1979_s12 + $0xc] sm:$0xf] %vm1028_vm1, %v1390_v27  ;;  %v1388_v33 = vpack.c.bf16 %v833_v29, %v833_v29  ;;  %v1499_v34 = vpop.f32.mrf.mxu1  ;;  %v854_v35 = vadd.f32 %v1479_v0, %v1969_v3 }
 0x112   : > { %1108 = vst.msk [vmem:[%s2012_s22 + $0x1c] sm:$0xf] %vm1028_vm1, %v1410_v30  ;;  %v1408_v36 = vpack.c.bf16 %v913_v31, %v913_v31  ;;  %v934_v63 = vadd.f32 %v1499_v34, %v672_v21  ;;  %v845_v37 = vpop.f32.mrf.mxu0 }
 0x113   : > { %1030 = vst.msk [vmem:[%s1979_s12 + $0x4] sm:$0xf] %vm1028_vm1, %v1388_v33  ;;  %v1393_v38 = vpack.c.bf16 %v854_v35, %v854_v35  ;;  %v925_v40 = vpop.f32.mrf.mxu1  ;;  %v846_v41 = vadd.f32 %v845_v37, %v1965_v1  ;;  %v687_v49 = vpop.permute.xlu1 %686 }
 0x114   : > { %1106 = vst.msk [vmem:[%s2012_s22 + $0x14] sm:$0xf] %vm1028_vm1, %v1408_v36  ;;  %v1413_v42 = vpack.c.bf16 %v934_v63, %v934_v63  ;;  %v926_v3 = vadd.f32 %v925_v40, %v2031_v60  ;;  %v1480_v43 = vpop.f32.mrf.mxu0  ;;  %v692_v54 = vpop.permute.xlu0 %691 }
 0x115   : > { %1035 = vst.msk [vmem:[%s1979_s12 + $0x18] sm:$0xf] %vm1028_vm1, %v1393_v38  ;;  %v1391_v44 = vpack.c.bf16 %v846_v41, %v846_v41  ;;  %v1500_v45 = vpop.f32.mrf.mxu1  ;;  %v857_v46 = vadd.f32 %v1480_v43, %v1971_v4 }
 0x116   : > { %1111 = vst.msk [vmem:[%s2012_s22 + $0x28] sm:$0xf] %vm1028_vm1, %v1413_v42  ;;  %v1411_v47 = vpack.c.bf16 %v926_v3, %v926_v3  ;;  %v937_v48 = vadd.f32 %v1500_v45, %v677_v32  ;;  %v848_v1 = vpop.f32.mrf.mxu0 }
 0x117   : > { %1033 = vst.msk [vmem:[%s1979_s12 + $0x10] sm:$0xf] %vm1028_vm1, %v1391_v44  ;;  %v1394_v50 = vpack.c.bf16 %v857_v46, %v857_v46  ;;  %v928_v51 = vpop.f32.mrf.mxu1  ;;  %v849_v52 = vadd.f32 %v848_v1, %v1967_v2  ;;  %v697_v5 = vpop.permute.xlu1 %696 }
 0x118   : > { %1109 = vst.msk [vmem:[%s2012_s22 + $0x20] sm:$0xf] %vm1028_vm1, %v1411_v47  ;;  %v1414_v53 = vpack.c.bf16 %v937_v48, %v937_v48  ;;  %v929_v4 = vadd.f32 %v928_v51, %v667_v62 }
 0x119   : > { %1036 = vst.msk [vmem:[%s1979_s12 + $0x1c] sm:$0xf] %vm1028_vm1, %v1394_v50  ;;  %v1392_v55 = vpack.c.bf16 %v849_v52, %v849_v52  ;;  %v1503_v56 = vpop.f32.mrf.mxu1 }
 0x11a   : > { %1112 = vst.msk [vmem:[%s2012_s22 + $0x2c] sm:$0xf] %vm1028_vm1, %v1414_v53  ;;  %v1412_v57 = vpack.c.bf16 %v929_v4, %v929_v4  ;;  %v950_v58 = vadd.f32 %v1503_v56, %v692_v54 }
 0x11b   : > { %1034 = vst.msk [vmem:[%s1979_s12 + $0x14] sm:$0xf] %vm1028_vm1, %v1392_v55  ;;  %v941_v2 = vpop.f32.mrf.mxu1 }
 0x11c   : > { %1110 = vst.msk [vmem:[%s2012_s22 + $0x24] sm:$0xf] %vm1028_vm1, %v1412_v57  ;;  %v1417_v59 = vpack.c.bf16 %v950_v58, %v950_v58  ;;  %v942_v60 = vadd.f32 %v941_v2, %v682_v39 }
 0x11d   : > { %v1504_v6 = vpop.f32.mrf.mxu1 }
 0x11e   : > { %1115 = vst.msk [vmem:[%s2012_s22 + $0x38] sm:$0xf] %vm1028_vm1, %v1417_v59  ;;  %v1415_v7 = vpack.c.bf16 %v942_v60, %v942_v60  ;;  %v953_v8 = vadd.f32 %v1504_v6, %v697_v5 }
 0x11f   : > { %v944_v9 = vpop.f32.mrf.mxu1 }
 0x120   : > { %1113 = vst.msk [vmem:[%s2012_s22 + $0x30] sm:$0xf] %vm1028_vm1, %v1415_v7  ;;  %v1418_v10 = vpack.c.bf16 %v953_v8, %v953_v8  ;;  %v945_v11 = vadd.f32 %v944_v9, %v687_v49 }
 0x122   : > { %1116 = vst.msk [vmem:[%s2012_s22 + $0x3c] sm:$0xf] %vm1028_vm1, %v1418_v10  ;;  %v1416_v12 = vpack.c.bf16 %v945_v11, %v945_v11 }
 0x124   : > { %1114 = vst.msk [vmem:[%s2012_s22 + $0x34] sm:$0xf] %vm1028_vm1, %v1416_v12 }
 0x125 PF: > { %p1513_p4 = scmp.ge.s32.totalorder %s1669_s29, 2  ;;  %s1170_s11 = sand.u32 1, %s1649_s24  }
 0x126   : > { %s1171_s12 = scalar_lea.sflag [#allocation3], %s1170_s11 }
 0x127   : > { %p1510_p0 = pnand %p1513_p4, %p1764_p8 }
 0x129   : > { %p1511_p1 = pneg %p1510_p0 }
 0x12b   : > { %1644 = dma.done.wait (%p1511_p1), %s1171_s12, 128  }
 0x12c   : > { %1646 = vsyncadd (%p1511_p1), %s1171_s12, 4294967168  ;;  %s21_s29 = sadd.s32 1, %s1669_s29   ;;  %s2149_s24 = smov %s1653_s25 }
 0x12d   : > { %p18_p2 = scmp.ge.s32.totalorder %s21_s29, 4   ;;  %s2150_s25 = smov %s1657_s26 }
 0x12e   : > { %s2151_s26 = smov %s1770_s14  ;;  %s2152_s27 = smov %s1665_s28 }
 0x12f   : > { %s2153_s28 = smov %s2155_s9  ;;  %20 = sbr.rel (!%p18_p2) target bundleno = 4 (0x4), region = 99 }
 0x134   :  { %1198 = vsyncpa [#allocation3], 1 }
 0x135   :  { %1200 = vsyncpa [#allocation3 + $0x1], 1 }

</bundles_post_ra>
